<compile_context>
chip_gen: v6e
topology: v6e:2x2x1
jax: 0.10.0
libtpu: 0.0.40
codegen_flags: <defaults>
</compile_context>

<pallas_src>
import jax
import jax.numpy as jnp
from jax.experimental import pallas as pl
from jax.experimental.pallas import tpu as pltpu

_MIB = 1 << 20


# ------------------------------ VMEM budgeting --------------------------------

def _physical_vmem_bytes():
    """Physical VMEM per TensorCore; conservative 64 MiB (v7x) if the query fails."""
    try:
        return int(pltpu.get_tpu_info().vmem_capacity_bytes)
    except Exception:
        return 64 * _MIB


def _usable_vmem_bytes():
    # Leave ~12 MiB headroom for Mosaic internal scratch / misc buffers.
    return max(_physical_vmem_bytes() - 12 * _MIB, 16 * _MIB)


# ----------------------------- fused (small) path -----------------------------

def _mlp_fused_kernel(x_ref, w_ref, b_ref, o_ref):
    num_layers = w_ref.shape[0]               # static at trace time
    h = x_ref[...].astype(jnp.float32)
    # Fully-unrolled layer loop with static indices: each w_ref[l] is a static
    # slice of the VMEM-resident weight stack, fed straight to the MXU.
    for l in range(num_layers):
        lhs = h.astype(w_ref.dtype)           # bf16 streaming keeps MXU native path
        h = jnp.dot(lhs, w_ref[l], preferred_element_type=jnp.float32)
        h = h + b_ref[l:l + 1, :]             # 2-D static slice, broadcasts over rows
        if l != num_layers - 1:               # ReLU on all but the last layer
            h = jnp.maximum(h, 0.0)
    o_ref[...] = h.astype(o_ref.dtype)        # single output store


def _mlp_forward_fused(x, weights_t, biases, *, vmem_limit_bytes):
    B, E = x.shape
    L = weights_t.shape[0]
    return pl.pallas_call(
        _mlp_fused_kernel,
        out_shape=jax.ShapeDtypeStruct((B, E), x.dtype),
        grid_spec=pltpu.PrefetchScalarGridSpec(
            num_scalar_prefetch=0,
            grid=(1,),
            in_specs=[
                pl.BlockSpec((B, E), lambda i: (0, 0)),        # input
                pl.BlockSpec((L, E, E), lambda i: (0, 0, 0)),  # all weights at once
                pl.BlockSpec((L, E), lambda i: (0, 0)),        # all biases at once
            ],
            out_specs=pl.BlockSpec((B, E), lambda i: (0, 0)),
        ),
        compiler_params=pltpu.CompilerParams(
            dimension_semantics=("arbitrary",),
            vmem_limit_bytes=int(vmem_limit_bytes),
        ),
    )(x, weights_t, biases)


# --------------------------- streaming (large) path ----------------------------

def _mlp_stream_kernel(x_ref, w_ref, b_ref, o_ref, act0_ref, act1_ref):
    # grid = (batch_tiles, layers, n_tiles); layers/n_tiles are sequential.
    l = pl.program_id(1)
    n = pl.program_id(2)
    last = pl.num_programs(1) - 1
    tn = w_ref.shape[1]                       # static output-column tile width
    col = pl.multiple_of(n * tn, tn)          # lane-aligned column offset

    # Load this batch tile's input once, before its first layer.
    @pl.when(jnp.logical_and(l == 0, n == 0))
    def _():
        act0_ref[...] = x_ref[...].astype(jnp.float32)

    def layer_step(src_ref, dst_ref):
        # Cast LHS to the streamed weight dtype (bf16 streaming stays on the MXU's
        # native bf16 path); accumulate in f32.
        lhs = src_ref[...].astype(w_ref.dtype)
        h = jnp.dot(lhs, w_ref[...], preferred_element_type=jnp.float32)
        h = h + b_ref[...]                    # (1, TN) broadcasts over rows

        @pl.when(l != last)
        def _():                              # hidden layer: ReLU into ping-pong dst
            dst_ref[:, pl.ds(col, tn)] = jnp.maximum(h, 0.0)

        @pl.when(l == last)
        def _():                              # final layer: single gated output store
            o_ref[...] = h.astype(o_ref.dtype)

    # Ping-pong activation buffers selected by layer parity (static refs only,
    # no dynamic leading-axis indexing in the hot body).
    @pl.when(l % 2 == 0)
    def _():
        layer_step(act0_ref, act1_ref)

    @pl.when(l % 2 == 1)
    def _():
        layer_step(act1_ref, act0_ref)


def _stream_vmem_need(E, tb, tn, w_isz, x_isz, out_isz):
    """Upper-bound VMEM working set (bytes) for the streaming kernel."""
    return (2 * E * tn * w_isz          # weight slab, double-buffered
            + 2 * tn * 4                # bias tile, double-buffered
            + 2 * tb * E * x_isz        # input block (budget 2x)
            + 2 * tb * E * 4            # ping-pong f32 activation scratch
            + 2 * tb * tn * out_isz     # output block, double-buffered
            + 2 * _MIB)                 # slack


def _choose_tile_b(B):
    if B <= 256:
        return B
    for tb in (256, 128, 64, 32, 16, 8):
        if B % tb == 0:
            return tb
    return B


def _choose_tile_n(E, tb, w_isz, x_isz, out_isz, budget):
    if E % 128 == 0:
        cands = sorted({t for t in (E, 2048, 1024, 512, 256, 128)
                        if t <= E and E % t == 0}, reverse=True)
    else:
        # TODO(synk): pad E up to a multiple of 128 to allow output-dim tiling for
        # large, non-aligned embedding sizes.
        cands = [E]
    for tn in cands:
        if _stream_vmem_need(E, tb, tn, w_isz, x_isz, out_isz) <= budget:
            return tn
    raise ValueError(
        "MLP streaming kernel does not fit VMEM: embedding_size=%d, batch_tile=%d, "
        "weight_itemsize=%d; smallest working set %d bytes exceeds budget %d bytes."
        % (E, tb, w_isz,
           _stream_vmem_need(E, tb, cands[-1], w_isz, x_isz, out_isz), budget))


def _mlp_forward_stream(x, weights_t, biases, *, tile_n=None, tile_b=None):
    B, E = x.shape
    L = weights_t.shape[0]
    w_isz = jnp.dtype(weights_t.dtype).itemsize
    x_isz = jnp.dtype(x.dtype).itemsize
    usable = _usable_vmem_bytes()

    tb = tile_b if tile_b is not None else _choose_tile_b(B)
    assert B % tb == 0, "batch tile must divide batch"
    tn = tile_n if tile_n is not None else _choose_tile_n(E, tb, w_isz, x_isz, x_isz, usable)
    assert E % tn == 0, "output tile must divide embedding size"

    need = _stream_vmem_need(E, tb, tn, w_isz, x_isz, x_isz)
    if need > usable:   # fail loudly instead of silently clamping (perf review)
        raise ValueError(
            "Streaming MLP working set (%d bytes) exceeds usable VMEM (%d bytes); "
            "reduce tile_n/tile_b or stream weights in bf16." % (need, usable))

    nb, nt = B // tb, E // tn
    vmem_limit = int(min(usable, max(need + 8 * _MIB, 32 * _MIB)))

    return pl.pallas_call(
        _mlp_stream_kernel,
        out_shape=jax.ShapeDtypeStruct((B, E), x.dtype),
        grid_spec=pltpu.PrefetchScalarGridSpec(
            num_scalar_prefetch=0,
            grid=(nb, L, nt),
            in_specs=[
                # Input batch tile: constant across (l, n), kept resident.
                # TODO(synk): move x to memory_space=pl.ANY with a one-shot manual
                # copy to reclaim its double buffer at very large B*E on v7x.
                pl.BlockSpec((tb, E), lambda b, l, n: (b, 0)),
                # Per-layer (E, TN) weight slab; leading layer dim squeezed.
                pl.BlockSpec((None, E, tn), lambda b, l, n: (l, 0, n)),
                # Per-layer bias tile.
                pl.BlockSpec((1, tn), lambda b, l, n: (l, n)),
            ],
            out_specs=pl.BlockSpec((tb, tn), lambda b, l, n: (b, n)),
            scratch_shapes=[pltpu.VMEM((tb, E), jnp.float32),   # ping
                            pltpu.VMEM((tb, E), jnp.float32)],  # pong
        ),
        compiler_params=pltpu.CompilerParams(
            # Batch tiles are independent (megacore-shardable); layer and column
            # axes are strictly sequential.
            dimension_semantics=("parallel", "arbitrary", "arbitrary"),
            vmem_limit_bytes=vmem_limit,
        ),
    )(x, weights_t, biases)


# --------------------------------- dispatcher ----------------------------------

def mlp_forward(x, weights_t, biases, *, weight_dtype=None):
    """x: (B, E); weights_t: (L, E, E) pre-transposed to (in, out); biases: (L, E).

    weight_dtype: optional streaming dtype for the weights (e.g. jnp.bfloat16) —
    halves HBM traffic in the bandwidth-bound regime; dots still accumulate in f32.
    """
    if weight_dtype is not None and weights_t.dtype != jnp.dtype(weight_dtype):
        weights_t = weights_t.astype(weight_dtype)
    if biases.dtype != jnp.float32:
        biases = biases.astype(jnp.float32)

    B, E = x.shape
    L = weights_t.shape[0]
    w_isz = jnp.dtype(weights_t.dtype).itemsize
    x_isz = jnp.dtype(x.dtype).itemsize
    param_bytes = L * E * E * w_isz + L * E * 4

    usable = _usable_vmem_bytes()
    # Chip-aware fused threshold: stay well inside usable VMEM even with the
    # default double-buffered specs; larger models stream (which also hides the
    # otherwise-serialized prologue weight DMA).
    fused_param_limit = min(6 * _MIB, usable // 8)
    if param_bytes <= fused_param_limit:
        fused_need = 2 * (param_bytes + 2 * B * E * x_isz) + 4 * _MIB
        vmem_limit = min(usable, max(fused_need, 32 * _MIB))
        return _mlp_forward_fused(x, weights_t, biases, vmem_limit_bytes=vmem_limit)
    return _mlp_forward_stream(x, weights_t, biases)


# ------------------------------- params / reference ----------------------------

def init_params(key, embedding_size, num_layers):
    """Deterministic init mimicking nn.Linear default U(-1/sqrt(fan_in), 1/sqrt(fan_in))."""
    bound = 1.0 / jnp.sqrt(jnp.float32(embedding_size))
    kw, kb = jax.random.split(key)
    # PyTorch weight is (out, in); store transposed (L, in, out) for the kernel.
    w = jax.random.uniform(
        kw, (num_layers, embedding_size, embedding_size),
        minval=-bound, maxval=bound, dtype=jnp.float32)
    b = jax.random.uniform(
        kb, (num_layers, embedding_size),
        minval=-bound, maxval=bound, dtype=jnp.float32)
    return w, b


def reference_forward(x, weights_t, biases, compute_dtype=None):
    """Pure-JAX reference; compute_dtype mimics the kernel's weight-dtype casting."""
    h = x.astype(jnp.float32)
    L = weights_t.shape[0]
    for l in range(L):
        w = weights_t[l]
        lhs = h
        if compute_dtype is not None:
            w = w.astype(compute_dtype)
            lhs = h.astype(compute_dtype)
        h = jnp.dot(lhs, w, preferred_element_type=jnp.float32,
                    precision=jax.lax.Precision.HIGHEST)
        h = h + biases[l].astype(jnp.float32)
        if l != L - 1:
            h = jnp.maximum(h, 0.0)
    return h.astype(x.dtype)


if __name__ == "__main__":
    key = jax.random.PRNGKey(0)
    kx, kp, kx2, kp2 = jax.random.split(key, 4)

    # --- small model: fused single-invocation path ---
    E, L, B = 32, 3, 8
    x = jax.random.normal(kx, (B, E), dtype=jnp.float32)
    w, b = init_params(kp, E, L)
    ref = reference_forward(x, w, b)

    out_fused = jax.block_until_ready(mlp_forward(x, w, b))
    assert out_fused.shape == (B, E)
    assert jnp.allclose(out_fused, ref, atol=1e-3, rtol=1e-4), "fused mismatch vs reference"

    # --- same model through the streaming path (degenerate TN == E, single tile) ---
    out_stream = jax.block_until_ready(_mlp_forward_stream(x, w, b))
    assert jnp.allclose(out_stream, ref, atol=1e-3, rtol=1e-4), "stream mismatch vs reference"

    # --- larger model: exercise the output-dim-tiled streaming path (TN=128, 2 tiles) ---
    E2, L2, B2 = 256, 3, 8
    x2 = jax.random.normal(kx2, (B2, E2), dtype=jnp.float32)
    w2, b2 = init_params(kp2, E2, L2)
    ref2 = reference_forward(x2, w2, b2)
    out_tiled = jax.block_until_ready(_mlp_forward_stream(x2, w2, b2, tile_n=128))
    assert jnp.allclose(out_tiled, ref2, atol=1e-3, rtol=1e-3), "tiled stream mismatch vs reference"

    # --- bf16 weight streaming (bandwidth optimization), fused and tiled-stream ---
    ref_bf16 = reference_forward(x2, w2, b2, compute_dtype=jnp.bfloat16)
    out_bf16_fused = jax.block_until_ready(
        mlp_forward(x2, w2, b2, weight_dtype=jnp.bfloat16))
    assert jnp.allclose(out_bf16_fused, ref_bf16, atol=2e-2, rtol=2e-2), "bf16 fused mismatch"
    out_bf16_stream = jax.block_until_ready(
        _mlp_forward_stream(x2, w2.astype(jnp.bfloat16), b2, tile_n=128))
    assert jnp.allclose(out_bf16_stream, ref_bf16, atol=2e-2, rtol=2e-2), "bf16 stream mismatch"

    print("KERNEL_OK")
</pallas_src>

<mosaic_0001>
module attributes {stable_mosaic.version = 11 : i64} {
  func.func @_mlp_fused_kernel(%arg0: i32, %arg1: memref<8x32xf32, #tpu.memory_space<vmem>>, %arg2: memref<3x32x32xf32, #tpu.memory_space<vmem>>, %arg3: memref<3x32xf32, #tpu.memory_space<vmem>>, %arg4: memref<8x32xf32, #tpu.memory_space<vmem>>) attributes {dimension_semantics = [#tpu.dimension_semantics<arbitrary>], iteration_bounds = array<i64: 1>, scalar_prefetch = 0 : i64, scratch_operands = 0 : i64, tpu.core_type = #tpu.core_type<tc>, window_params = [{pipeline_mode = #tpu.pipeline_mode<synchronous>, transform_indices = @transform_0, window_bounds = array<i64: 8, 32>}, {pipeline_mode = #tpu.pipeline_mode<synchronous>, transform_indices = @transform_1, window_bounds = array<i64: 3, 32, 32>}, {pipeline_mode = #tpu.pipeline_mode<synchronous>, transform_indices = @transform_2, window_bounds = array<i64: 3, 32>}, {pipeline_mode = #tpu.pipeline_mode<synchronous>, transform_indices = @transform_3, window_bounds = array<i64: 8, 32>}]} {
    %c0 = arith.constant 0 : index
    %c0_0 = arith.constant 0 : index
    %0 = vector.load %arg1[%c0, %c0_0] : memref<8x32xf32, #tpu.memory_space<vmem>>, vector<8x32xf32>
    %c0_1 = arith.constant 0 : index
    %c0_2 = arith.constant 0 : index
    %c0_3 = arith.constant 0 : index
    %1 = vector.load %arg2[%c0_1, %c0_2, %c0_3] : memref<3x32x32xf32, #tpu.memory_space<vmem>>, vector<1x32x32xf32>
    %2 = vector.shape_cast %1 : vector<1x32x32xf32> to vector<32x32xf32>
    %cst = arith.constant dense<0.000000e+00> : vector<8x32xf32>
    %3 = tpu.matmul %0, %2, %cst {dimension_numbers = #tpu.dot_dimension_numbers<[1], [0], [0], [1], [0, 0, 1, 1], [], []>} : vector<8x32xf32>, vector<32x32xf32>, vector<8x32xf32> -> vector<8x32xf32>
    %c0_4 = arith.constant 0 : index
    %c0_5 = arith.constant 0 : index
    %4 = vector.load %arg3[%c0_4, %c0_5] : memref<3x32xf32, #tpu.memory_space<vmem>>, vector<1x32xf32>
    %5 = vector.broadcast %4 : vector<1x32xf32> to vector<8x32xf32>
    %6 = arith.addf %3, %5 : vector<8x32xf32>
    %cst_6 = arith.constant 0.000000e+00 : f32
    %7 = vector.broadcast %cst_6 : f32 to vector<8x32xf32>
    %8 = arith.maximumf %6, %7 : vector<8x32xf32>
    %c1 = arith.constant 1 : index
    %c0_7 = arith.constant 0 : index
    %c0_8 = arith.constant 0 : index
    %9 = vector.load %arg2[%c1, %c0_7, %c0_8] : memref<3x32x32xf32, #tpu.memory_space<vmem>>, vector<1x32x32xf32>
    %10 = vector.shape_cast %9 : vector<1x32x32xf32> to vector<32x32xf32>
    %cst_9 = arith.constant dense<0.000000e+00> : vector<8x32xf32>
    %11 = tpu.matmul %8, %10, %cst_9 {dimension_numbers = #tpu.dot_dimension_numbers<[1], [0], [0], [1], [0, 0, 1, 1], [], []>} : vector<8x32xf32>, vector<32x32xf32>, vector<8x32xf32> -> vector<8x32xf32>
    %c1_10 = arith.constant 1 : index
    %c0_11 = arith.constant 0 : index
    %12 = vector.load %arg3[%c1_10, %c0_11] : memref<3x32xf32, #tpu.memory_space<vmem>>, vector<1x32xf32>
    %13 = vector.broadcast %12 : vector<1x32xf32> to vector<8x32xf32>
    %14 = arith.addf %11, %13 : vector<8x32xf32>
    %cst_12 = arith.constant 0.000000e+00 : f32
    %15 = vector.broadcast %cst_12 : f32 to vector<8x32xf32>
    %16 = arith.maximumf %14, %15 : vector<8x32xf32>
    %c2 = arith.constant 2 : index
    %c0_13 = arith.constant 0 : index
    %c0_14 = arith.constant 0 : index
    %17 = vector.load %arg2[%c2, %c0_13, %c0_14] : memref<3x32x32xf32, #tpu.memory_space<vmem>>, vector<1x32x32xf32>
    %18 = vector.shape_cast %17 : vector<1x32x32xf32> to vector<32x32xf32>
    %cst_15 = arith.constant dense<0.000000e+00> : vector<8x32xf32>
    %19 = tpu.matmul %16, %18, %cst_15 {dimension_numbers = #tpu.dot_dimension_numbers<[1], [0], [0], [1], [0, 0, 1, 1], [], []>} : vector<8x32xf32>, vector<32x32xf32>, vector<8x32xf32> -> vector<8x32xf32>
    %c2_16 = arith.constant 2 : index
    %c0_17 = arith.constant 0 : index
    %20 = vector.load %arg3[%c2_16, %c0_17] : memref<3x32xf32, #tpu.memory_space<vmem>>, vector<1x32xf32>
    %21 = vector.broadcast %20 : vector<1x32xf32> to vector<8x32xf32>
    %22 = arith.addf %19, %21 : vector<8x32xf32>
    %c0_18 = arith.constant 0 : index
    %c0_19 = arith.constant 0 : index
    %23 = vector.load %arg4[%c0_18, %c0_19] : memref<8x32xf32, #tpu.memory_space<vmem>>, vector<8x32xf32>
    tpu.vector_store %arg4[%c0_18, %c0_19], %22 {strides = array<i32>} : memref<8x32xf32, #tpu.memory_space<vmem>>, vector<8x32xf32>,
    return
  }
  func.func @transform_0(%arg0: i32) -> (i32, i32) {
    %c0_i32 = arith.constant 0 : i32
    %c0_i32_0 = arith.constant 0 : i32
    %c0_i32_1 = arith.constant 0 : i32
    return %c0_i32, %c0_i32_0 : i32, i32
  }
  func.func @transform_1(%arg0: i32) -> (i32, i32, i32) {
    %c0_i32 = arith.constant 0 : i32
    %c0_i32_0 = arith.constant 0 : i32
    %c0_i32_1 = arith.constant 0 : i32
    %c0_i32_2 = arith.constant 0 : i32
    return %c0_i32, %c0_i32_0, %c0_i32_1 : i32, i32, i32
  }
  func.func @transform_2(%arg0: i32) -> (i32, i32) {
    %c0_i32 = arith.constant 0 : i32
    %c0_i32_0 = arith.constant 0 : i32
    %c0_i32_1 = arith.constant 0 : i32
    return %c0_i32, %c0_i32_0 : i32, i32
  }
  func.func @transform_3(%arg0: i32) -> (i32, i32) {
    %c0_i32 = arith.constant 0 : i32
    %c0_i32_0 = arith.constant 0 : i32
    %c0_i32_1 = arith.constant 0 : i32
    return %c0_i32, %c0_i32_0 : i32, i32
  }
}

</mosaic_0001>

<bundles_post_ra>
// kernel: tpu_custom_call.1
= control target key start
LH: loop header
LB: loop body
LE: loop exit
PB: predicated region body
PF: predicated region fallthrough
CT: control target
= control target key end

     0   :  { %8 = vsyncpa [#allocation3], 0  ;;  %s516_s0 = inlined_call_operand.hbm [shape: f32[8,32], index: 0, kind: input, shape index: {}]   ;;  %s517_s1 = inlined_call_operand.hbm [shape: f32[3,32,32], index: 1, kind: input, shape index: {}]   ;;  %s518_s2 = inlined_call_operand.hbm [shape: f32[3,32], index: 2, kind: input, shape index: {}]   ;;  %s519_s3 = inlined_call_operand.hbm [shape: f32[8,32], index: 3, kind: output, shape index: {}]  }
   0x1   :  { %9 = vsyncpa [#allocation6], 0 }
   0x2   :  { %10 = vsyncpa [#allocation4], 0  ;;  %s469_s12 = smov [#allocation5]  }
   0x3   :  { %s26_s13 = sshll.u32 %s469_s12, 4  ;;  %s27_s13 = int_to_ptr.vmem [resolvable:$true] %s26_s13 }
   0x4   :  { %s391_s14 = scalar_lea.vmem %s27_s13, 1536  ;;  %p396_p1 = scmp.lt.s32.totalorder %s27_s13, %s27_s13 }
   0x5   :  { %p392_p0 = scmp.ne.s32.totalorder %s27_s13, %s391_s14  ;;  %p397_p2 = scmp.lt.s32.totalorder %s391_s14, %s391_s14 }
   0x7   :  { %p398_p3 = por %p397_p2, %p396_p1 }
   0x9   :  { %p399_p4 = pnand %p398_p3, %p392_p0 }
   0xb   :  { %402 = shalt.err (!%p399_p4)
}
   0xc   :  { %s470_s15 = smov 128   ;;  %s471_s16 = smov 8  }
   0xd   :  { %32 = dma.hbm_to_vmem [thread:$0]  %s517_s1, 1536, %s27_s13, [#allocation6], %s470_s15, %s470_s15, %s471_s16  }
   0xe   :  { %s472_s19 = smov [#allocation2]   ;;  %s473_s21 = smov [#allocation7]  }
   0xf   :  { %s17_s20 = sshll.u32 %s472_s19, 4  ;;  %s39_s22 = sshll.u32 %s473_s21, 4  ;;  %s18_s20 = int_to_ptr.vmem [resolvable:$true] %s17_s20  ;;  %s40_s22 = int_to_ptr.vmem [resolvable:$true] %s39_s22 }
  0x10   :  { %s411_s23 = scalar_lea.vmem %s18_s20, 128  ;;  %p416_p6 = scmp.lt.s32.totalorder %s18_s20, %s18_s20 }
  0x11   :  { %p412_p5 = scmp.ne.s32.totalorder %s18_s20, %s411_s23  ;;  %p417_p7 = scmp.lt.s32.totalorder %s411_s23, %s411_s23 }
  0x13   :  { %p418_p8 = por %p417_p7, %p416_p6 }
  0x15   :  { %p419_p9 = pnand %p418_p8, %p412_p5 }
  0x17   :  { %422 = shalt.err (!%p419_p9)
}
  0x18   :  { %20 = dma.hbm_to_vmem [thread:$0]  %s516_s0, 128, %s18_s20, [#allocation3]  }
  0x19   :  { %s431_s26 = scalar_lea.vmem %s40_s22, 64  ;;  %p436_p11 = scmp.lt.s32.totalorder %s40_s22, %s40_s22 }
  0x1a   :  { %p432_p10 = scmp.ne.s32.totalorder %s40_s22, %s431_s26  ;;  %p437_p12 = scmp.lt.s32.totalorder %s431_s26, %s431_s26 }
  0x1c   :  { %p438_p13 = por %p437_p12, %p436_p11 }
  0x1e   :  { %p439_p0 = pnand %p438_p13, %p432_p10 }
  0x20   :  { %442 = shalt.err (!%p439_p0)
}
  0x21   :  { %42 = dma.hbm_to_vmem [thread:$0]  %s518_s2, 64, %s40_s22, [#allocation6]  }
  0x22   :  { %463 = dma.done.wait [#allocation3], 128  }
  0x23   :  { %464 = vsyncadd [#allocation3], 4294967168 }
  0x24   :  { %465 = dma.done.wait [#allocation6], 1600  }
  0x25   :  { %466 = vsyncadd [#allocation6], 4294965696  ;;  %v474_v0 = vmov 0.0   ;;  %vm475_vm0 = vmmov 0   ;;  %v56_v1 = vld [vmem:[#allocation5 + $0x18] sm:$0xff]  ;;  %v55_v2 = vld [vmem:[#allocation5 + $0x10] sm:$0xff] }
  0x26   :  { %342 = vmatprep.subr.mxu0 %v474_v0  ;;  %350 = vmatprep.mubr.msk.f32.mxu0 %vm475_vm0, %v474_v0  ;;  %v141_v3 = vld [vmem:[#allocation5 + $0x38] sm:$0xff]  ;;  %v54_v4 = vld [vmem:[#allocation5 + $0x8] sm:$0xff]  ;;  %v53_v5 = vld [vmem:[#allocation5] sm:$0xff]  ;;  %vm62_vm1 = vcmask 261120   ;;  %s476_s0 = smov [#allocation8]  }
  0x27   :  { %353 = vmatprep.subr.mxu1 %v474_v0  ;;  %361 = vmatprep.mubr.msk.f32.mxu1 %vm475_vm0, %v474_v0  ;;  %v52_v6 = vld [vmem:[#allocation2] sm:$0xff]  ;;  %v140_v7 = vld [vmem:[#allocation5 + $0x30] sm:$0xff]  ;;  %v139_v8 = vld [vmem:[#allocation5 + $0x28] sm:$0xff]  ;;  %s311_s2 = sshll.u32 %s476_s0, 4  ;;  %s312_s2 = int_to_ptr.vmem [resolvable:$true] %s311_s2 }
  0x28   :  { %343 = vmatpush3.msra.mxu0 %v56_v1  ;;  %354 = vmatpush3.msra.mxu1 %v141_v3  ;;  %v138_v9 = vld [vmem:[#allocation5 + $0x20] sm:$0xff]  ;;  %v225_v10 = vld [vmem:[#allocation5 + $0x58] sm:$0xff]  ;;  %v224_v16 = vld [vmem:[#allocation5 + $0x50] sm:$0xff]  ;;  %s443_s28 = scalar_lea.vmem %s312_s2, 128  ;;  %p448_p2 = scmp.lt.s32.totalorder %s312_s2, %s312_s2 }
  0x29   :  { %344 = vmatprep.subr.mxu0 %v474_v0  ;;  %355 = vmatprep.subr.mxu1 %v474_v0  ;;  %v321_v11 = vld [vmem:[#allocation7] ss:$0 sm:$0xff]  ;;  %v223_v17 = vld [vmem:[#allocation5 + $0x48] sm:$0xff]  ;;  %v323_v19 = vld [vmem:[#allocation7 + $0x1] ss:$0 sm:$0xff]  ;;  %p444_p1 = scmp.ne.s32.totalorder %s312_s2, %s443_s28  ;;  %p449_p3 = scmp.lt.s32.totalorder %s443_s28, %s443_s28 }
  0x2a   :  { %345 = vmatpush3.msra.mxu0 %v55_v2  ;;  %356 = vmatpush3.msra.mxu1 %v140_v7  ;;  %v222_v18 = vld [vmem:[#allocation5 + $0x40] sm:$0xff] }
  0x2b   :  { %346 = vmatprep.subr.mxu0 %v474_v0  ;;  %357 = vmatprep.subr.mxu1 %v474_v0  ;;  %v325_v24 = vld [vmem:[#allocation7 + $0x2] ss:$0 sm:$0xff]  ;;  %p450_p4 = por %p449_p3, %p448_p2 }
  0x2c   :  { %347 = vmatpush3.msra.mxu0 %v54_v4  ;;  %358 = vmatpush3.msra.mxu1 %v139_v8 }
  0x2d   :  { %348 = vmatprep.subr.mxu0 %v474_v0  ;;  %359 = vmatprep.subr.mxu1 %v474_v0  ;;  %p451_p5 = pnand %p450_p4, %p444_p1 }
  0x2e   :  { %349 = vmatpush3.msra.mxu0 %v53_v5  ;;  %360 = vmatpush3.msra.mxu1 %v138_v9 }
  0x2f   :  { %351 = vmatmul.mubr.msk.f32.vlgmr.msra.gmra.mxu0 %vm62_vm1, %v52_v6  ;;  %364 = vmatprep.subr.mxu0 %v474_v0 }
  0x30   :  { %372 = vmatprep.mubr.msk.f32.mxu0 %vm475_vm0, %v474_v0  ;;  %365 = vmatpush3.msra.mxu0 %v225_v10 }
  0x31   :  { %366 = vmatprep.subr.mxu0 %v474_v0 }
  0x32   :  { %367 = vmatpush3.msra.mxu0 %v224_v16 }
  0x33   :  { %368 = vmatprep.subr.mxu0 %v474_v0 }
  0x34   :  { %369 = vmatpush3.msra.mxu0 %v223_v17 }
  0x35   :  { %370 = vmatprep.subr.mxu0 %v474_v0 }
  0x36   :  { %371 = vmatpush3.msra.mxu0 %v222_v18 }
  0xef   :  { %v132_v12 = vpop.f32.mrf.mxu0 }
  0xf0   :  { %v133_v13 = vadd.f32 %v321_v11, %v132_v12 }
  0xf1   :  { %v352_v14 = vpop.f32.mrf.mxu0 }
  0xf2   :  { %v136_v15 = vmax.f32 %v133_v13, 0.0 }
  0xf4   :  { %362 = vmatmul.mubr.msk.f32.vlgmr.msra.gmra.mxu1 %vm62_vm1, %v136_v15 }
 0x1b4   :  { %v216_v20 = vpop.f32.mrf.mxu1 }
 0x1b5   :  { %v217_v21 = vadd.f32 %v323_v19, %v216_v20 }
 0x1b6   :  { %v363_v22 = vpop.f32.mrf.mxu1 }
 0x1b7   :  { %v220_v23 = vmax.f32 %v217_v21, 0.0 }
 0x1b9   :  { %373 = vmatmul.mubr.msk.f32.vlgmr.msra.gmra.mxu0 %vm62_vm1, %v220_v23 }
 0x279   :  { %v300_v25 = vpop.f32.mrf.mxu0 }
 0x27a   :  { %v301_v26 = vadd.f32 %v325_v24, %v300_v25 }
 0x27b   :  { %v374_v27 = vpop.f32.mrf.mxu0 }
 0x27c   :  { %304 = vst.msk [vmem:[#allocation8] sm:$0xff] %vm62_vm1, %v301_v26 }
 0x27d   :  { %454 = shalt.err (!%p451_p5)
}
 0x27e   :  { %314 = dma.vmem_to_hbm [thread:$0]  %s312_s2, 128, %s519_s3, [#allocation4]  }
 0x27f   :  { %467 = dma.done.wait [#allocation4], 128  }
 0x280   :  { %468 = vsyncadd [#allocation4], 4294967168 }
 0x281   :  { %318 = vsyncpa [#allocation3], 1 }
 0x282   :  { %319 = vsyncpa [#allocation6], 1 }
 0x283   :  { %320 = vsyncpa [#allocation4], 1 }

</bundles_post_ra>
